<compile_context>
chip_gen: v7x
topology: tpu7x:2x2x1
jax: 0.10.0
libtpu: 0.0.40
codegen_flags: <defaults>
</compile_context>

<pallas_src>
import functools
import math

import jax
import jax.numpy as jnp
from jax import lax
from jax.experimental import pallas as pl
from jax.experimental.pallas import tpu as pltpu


def _make_kernel(K, HW, eps):
    """Fused group-norm + per-channel affine over one (1, C_TILE, HW) block."""
    inv_n = 1.0 / float(K * HW)          # 1 / (elements per group)

    def kernel(x_ref, wb_ref, p_ref, out_ref):
        # Stream the block in its native dtype; promote to f32 only in VMEM.
        y = x_ref[0].astype(jnp.float32)                    # (CT, HW)

        # ---- single stats pass: per-channel sum / sum-of-squares ----------
        s = jnp.sum(y, axis=1, keepdims=True)               # (CT, 1)
        ss = jnp.sum(y * y, axis=1, keepdims=True)          # (CT, 1)

        # Pack [s, ss] as the two columns of a (CT, 2) RHS (layout-safe,
        # no lane concatenate needed).
        col = lax.broadcasted_iota(jnp.int32, (s.shape[0], 2), 1)
        st = jnp.where(col == 0, s, ss)                     # (CT, 2)

        # ---- group-reduce + broadcast-back in ONE tiny dot ----------------
        # p_ref is the precomputed 0/1 membership matrix; its block index is
        # constant so it is DMA'd once and stays resident.  HIGHEST keeps the
        # f32 sums exact; the dot is (CT,CT)@(CT,2) and is fully hidden under
        # the HBM-bound elementwise pass.
        g = jnp.dot(p_ref[...], st, preferred_element_type=jnp.float32,
                    precision=lax.Precision.HIGHEST)        # (CT, 2)
        gmean = g[:, 0:1] * inv_n
        gvar = jnp.maximum(g[:, 1:2] * inv_n - gmean * gmean, 0.0)
        ginv = lax.rsqrt(gvar + eps)                        # EUP rsqrt

        # ---- fold normalization + per-channel affine into one FMA pass ----
        wb = wb_ref[0]                                      # (CT, 2) f32
        scale = ginv * wb[:, 0:1]
        shift = wb[:, 1:2] - gmean * scale
        out_ref[0] = (y * scale + shift).astype(out_ref.dtype)

    return kernel


def _choose_c_tile(C, K, HW, x_item, o_item, budget_bytes):
    """Largest channel tile (whole groups, sublane aligned) that fits VMEM."""
    base = (K * 8) // math.gcd(K, 8)        # multiple of K and of 8
    cands = {C}                             # full-C block is always legal
    t = base
    while t < C:
        if C % t == 0:
            cands.add(t)
        t += base

    def vmem_need(ct):
        data = 2 * ct * HW * (x_item + o_item)   # double-buffered in + out
        work = 2 * ct * HW * 4                   # f32 temporaries in the body
        side = 2 * ct * 2 * 4 + 2 * ct * ct * 4  # params + membership matrix
        return data + work + side

    fitting = [ct for ct in cands if vmem_need(ct) <= budget_bytes]
    ct = max(fitting) if fitting else min(cands)
    return ct, vmem_need(ct)


def transed_groupnorm_forward(x, weight, bias, num_groups=32, eps=1e-5):
    """Pallas forward matching transed_GroupNorm.forward."""
    N, C, H, W = x.shape
    # TODO(synk): only the C % num_groups == 0 case is handled; the transed
    # reshape that splits one channel across two groups is not modeled.
    assert C % num_groups == 0, "channels must split evenly into groups"
    K = C // num_groups
    HW = H * W

    # ---- inputs stay in their native dtype (no wrapper up/down casts) -----
    x3 = x.reshape(N, C, HW)
    x_item = jnp.dtype(x.dtype).itemsize
    o_item = x_item

    # ---- merge weight & bias into a single tiny (B_p, C, 2) operand -------
    w_flat = jnp.asarray(weight).reshape(-1, C)
    b_flat = jnp.asarray(bias).reshape(-1, C)
    B_p = max(w_flat.shape[0], b_flat.shape[0])
    assert B_p in (1, N)
    assert w_flat.shape[0] in (1, B_p) and b_flat.shape[0] in (1, B_p)
    wb = jnp.stack([jnp.broadcast_to(w_flat, (B_p, C)),
                    jnp.broadcast_to(b_flat, (B_p, C))],
                   axis=-1).astype(jnp.float32)              # (B_p, C, 2)

    # ---- generation-aware VMEM budget, tile choice, explicit vmem limit ---
    try:
        vmem_cap = int(pltpu.get_tpu_info().vmem_capacity_bytes)
    except Exception:
        vmem_cap = 64 << 20                  # conservative (v7x per-core size)
    c_tile, need_bytes = _choose_c_tile(C, K, HW, x_item, o_item,
                                        budget_bytes=int(0.70 * vmem_cap))
    assert c_tile % K == 0
    n_ct = C // c_tile
    steps = N * n_ct
    vmem_limit = max(32 << 20,
                     min(int(0.90 * vmem_cap), need_bytes + (16 << 20)))

    # ---- precomputed 0/1 membership matrix (same pattern for every tile) ---
    ids = jnp.arange(c_tile, dtype=jnp.int32) // K
    p = (ids[:, None] == ids[None, :]).astype(jnp.float32)   # (CT, CT)

    # ---- BlockSpecs --------------------------------------------------------
    x_spec_kwargs = {}
    if c_tile * HW * x_item < (1 << 20) and steps >= 4:
        # Small per-step blocks on a long grid: deepen the pipeline so DMA
        # stays ahead of the single elementwise apply pass.
        x_spec_kwargs["pipeline_mode"] = pl.Buffered(3)
    x_spec = pl.BlockSpec((1, c_tile, HW), lambda n, ct: (n, ct, 0),
                          **x_spec_kwargs)
    if B_p == 1:
        wb_spec = pl.BlockSpec((1, c_tile, 2), lambda n, ct: (0, ct, 0))
    else:
        wb_spec = pl.BlockSpec((1, c_tile, 2), lambda n, ct: (n, ct, 0))
    p_spec = pl.BlockSpec((c_tile, c_tile), lambda n, ct: (0, 0))
    out_spec = pl.BlockSpec((1, c_tile, HW), lambda n, ct: (n, ct, 0))

    cost = pl.CostEstimate(
        flops=int(N * 5 * C * HW + steps * 4 * c_tile * c_tile + N * 8 * C),
        transcendentals=int(N * C),
        bytes_accessed=int(N * C * HW * (x_item + o_item)
                           + B_p * C * 2 * 4 + c_tile * c_tile * 4),
    )

    kernel = _make_kernel(K, HW, eps)
    out = pl.pallas_call(
        kernel,
        out_shape=jax.ShapeDtypeStruct((N, C, HW), x.dtype),
        grid=(N, n_ct),
        in_specs=[x_spec, wb_spec, p_spec],
        out_specs=out_spec,
        compiler_params=pltpu.CompilerParams(
            dimension_semantics=("parallel", "parallel"),
            vmem_limit_bytes=int(vmem_limit)),
        cost_estimate=cost,
    )(x3, wb, p)

    return out.reshape(N, C, H, W)


# ------------------------- pure-JAX reference (check) -----------------------
def reference_forward(x, weight, bias, num_groups=32, eps=1e-5):
    N, C, H, W = x.shape
    y = x.reshape(N, num_groups, H, -1)
    m = jnp.mean(y, axis=(2, 3), keepdims=True)
    v = jnp.mean((y - m) ** 2, axis=(2, 3), keepdims=True)
    y = (y - m) / jnp.sqrt(v + eps)
    y = y.reshape(N, C, H, W)
    return y * weight + bias


if __name__ == "__main__":
    key = jax.random.PRNGKey(0)
    k1, k2, k3 = jax.random.split(key, 3)

    # Small shapes consistent with the module (num_groups=32 default).
    N, C, H, W, G = 2, 64, 16, 16, 32

    x = jax.random.normal(k1, (N, C, H, W), jnp.float32)
    # Parameters are ones/zeros in the module; perturb them so the per-sample
    # affine path is actually exercised (forward semantics unchanged).
    weight = (jnp.ones((N, C, 1, 1), jnp.float32)
              + 0.1 * jax.random.normal(k2, (N, C, 1, 1), jnp.float32))
    bias = 0.1 * jax.random.normal(k3, (N, C, 1, 1), jnp.float32)

    fwd = jax.jit(functools.partial(transed_groupnorm_forward,
                                    num_groups=G, eps=1e-5))
    out = jax.block_until_ready(fwd(x, weight, bias))
    ref = reference_forward(x, weight, bias, num_groups=G, eps=1e-5)

    assert out.shape == (N, C, H, W)
    assert out.dtype == x.dtype
    max_err = float(jnp.max(jnp.abs(out - ref)))
    if not bool(jnp.allclose(out, ref, atol=2e-3, rtol=2e-3)):
        raise AssertionError(f"kernel/reference mismatch, max abs err={max_err}")
    print("KERNEL_OK")
</pallas_src>

<mosaic_0001>
module attributes {stable_mosaic.version = 11 : i64} {
  func.func @kernel(%arg0: i32, %arg1: i32, %arg2: memref<1x64x256xf32, #tpu.memory_space<vmem>>, %arg3: memref<1x64x2xf32, #tpu.memory_space<vmem>>, %arg4: memref<64x64xf32, #tpu.memory_space<vmem>>, %arg5: memref<1x64x256xf32, #tpu.memory_space<vmem>>) attributes {dimension_semantics = [#tpu.dimension_semantics<parallel>, #tpu.dimension_semantics<parallel>], iteration_bounds = array<i64: 2, 1>, scalar_prefetch = 0 : i64, scratch_operands = 0 : i64, tpu.core_type = #tpu.core_type<tc>, window_params = [{transform_indices = @transform_0, window_bounds = array<i64: 1, 64, 256>}, {transform_indices = @transform_1, window_bounds = array<i64: 1, 64, 2>}, {pipeline_mode = #tpu.pipeline_mode<synchronous>, transform_indices = @transform_2, window_bounds = array<i64: 64, 64>}, {transform_indices = @transform_3, window_bounds = array<i64: 1, 64, 256>}]} {
    %c0 = arith.constant 0 : index
    %c0_0 = arith.constant 0 : index
    %c0_1 = arith.constant 0 : index
    %0 = vector.load %arg2[%c0, %c0_0, %c0_1] : memref<1x64x256xf32, #tpu.memory_space<vmem>>, vector<1x64x256xf32>
    %1 = vector.shape_cast %0 : vector<1x64x256xf32> to vector<64x256xf32>
    %cst = arith.constant dense<0.000000e+00> : vector<64xf32>
    %2 = vector.multi_reduction <add>, %1, %cst [1] : vector<64x256xf32> to vector<64xf32>
    %3 = vector.shape_cast %2 : vector<64xf32> to vector<64x1xf32>
    %4 = arith.mulf %1, %1 : vector<64x256xf32>
    %cst_2 = arith.constant dense<0.000000e+00> : vector<64xf32>
    %5 = vector.multi_reduction <add>, %4, %cst_2 [1] : vector<64x256xf32> to vector<64xf32>
    %6 = vector.shape_cast %5 : vector<64xf32> to vector<64x1xf32>
    %7 = tpu.iota {dimensions = array<i32: 1>} : vector<64x2xi32>
    %c0_i32 = arith.constant 0 : i32
    %8 = vector.broadcast %c0_i32 : i32 to vector<64x2xi32>
    %9 = arith.cmpi eq, %7, %8 : vector<64x2xi32>
    %10 = vector.shape_cast %3 : vector<64x1xf32> to vector<64x1xf32>
    %11 = vector.broadcast %10 : vector<64x1xf32> to vector<64x2xf32>
    %12 = vector.shape_cast %6 : vector<64x1xf32> to vector<64x1xf32>
    %13 = vector.broadcast %12 : vector<64x1xf32> to vector<64x2xf32>
    %14 = arith.select %9, %11, %13 : vector<64x2xi1>, vector<64x2xf32>
    %c0_3 = arith.constant 0 : index
    %c0_4 = arith.constant 0 : index
    %15 = vector.load %arg4[%c0_3, %c0_4] : memref<64x64xf32, #tpu.memory_space<vmem>>, vector<64x64xf32>
    %cst_5 = arith.constant dense<0.000000e+00> : vector<64x2xf32>
    %16 = tpu.matmul %15, %14, %cst_5 {dimension_numbers = #tpu.dot_dimension_numbers<[1], [0], [0], [1], [0, 0, 1, 1], [], []>, precision = #tpu.contract_precision<fp32>} : vector<64x64xf32>, vector<64x2xf32>, vector<64x2xf32> -> vector<64x2xf32>
    %17 = vector.extract_strided_slice %16 {offsets = [0, 0], sizes = [64, 1], strides = [1, 1]} : vector<64x2xf32> to vector<64x1xf32>
    %cst_6 = arith.constant 0.001953125 : f32
    %18 = vector.broadcast %cst_6 : f32 to vector<64x1xf32>
    %19 = arith.mulf %17, %18 : vector<64x1xf32>
    %20 = vector.extract_strided_slice %16 {offsets = [0, 1], sizes = [64, 1], strides = [1, 1]} : vector<64x2xf32> to vector<64x1xf32>
    %cst_7 = arith.constant 0.001953125 : f32
    %21 = vector.broadcast %cst_7 : f32 to vector<64x1xf32>
    %22 = arith.mulf %20, %21 : vector<64x1xf32>
    %23 = arith.mulf %19, %19 : vector<64x1xf32>
    %24 = arith.subf %22, %23 : vector<64x1xf32>
    %cst_8 = arith.constant 0.000000e+00 : f32
    %25 = vector.broadcast %cst_8 : f32 to vector<64x1xf32>
    %26 = arith.maximumf %24, %25 : vector<64x1xf32>
    %cst_9 = arith.constant 9.99999974E-6 : f32
    %27 = vector.broadcast %cst_9 : f32 to vector<64x1xf32>
    %28 = arith.addf %26, %27 : vector<64x1xf32>
    %29 = math.rsqrt %28 : vector<64x1xf32>
    %c0_10 = arith.constant 0 : index
    %c0_11 = arith.constant 0 : index
    %c0_12 = arith.constant 0 : index
    %30 = vector.load %arg3[%c0_10, %c0_11, %c0_12] : memref<1x64x2xf32, #tpu.memory_space<vmem>>, vector<1x64x2xf32>
    %31 = vector.shape_cast %30 : vector<1x64x2xf32> to vector<64x2xf32>
    %32 = vector.extract_strided_slice %31 {offsets = [0, 0], sizes = [64, 1], strides = [1, 1]} : vector<64x2xf32> to vector<64x1xf32>
    %33 = arith.mulf %29, %32 : vector<64x1xf32>
    %34 = vector.extract_strided_slice %31 {offsets = [0, 1], sizes = [64, 1], strides = [1, 1]} : vector<64x2xf32> to vector<64x1xf32>
    %35 = arith.mulf %19, %33 : vector<64x1xf32>
    %36 = arith.subf %34, %35 : vector<64x1xf32>
    %37 = vector.broadcast %33 : vector<64x1xf32> to vector<64x256xf32>
    %38 = arith.mulf %1, %37 : vector<64x256xf32>
    %39 = vector.broadcast %36 : vector<64x1xf32> to vector<64x256xf32>
    %40 = arith.addf %38, %39 : vector<64x256xf32>
    %c0_13 = arith.constant 0 : index
    %c0_14 = arith.constant 0 : index
    %c0_15 = arith.constant 0 : index
    %41 = vector.load %arg5[%c0_13, %c0_14, %c0_15] : memref<1x64x256xf32, #tpu.memory_space<vmem>>, vector<1x64x256xf32>
    %42 = vector.shape_cast %41 : vector<1x64x256xf32> to vector<64x256xf32>
    %43 = vector.shape_cast %40 : vector<64x256xf32> to vector<1x64x256xf32>
    tpu.vector_store %arg5[%c0_13, %c0_14, %c0_15], %43 {strides = array<i32>} : memref<1x64x256xf32, #tpu.memory_space<vmem>>, vector<1x64x256xf32>,
    return
  }
  func.func @transform_0(%arg0: i32, %arg1: i32) -> (i32, i32, i32) {
    %c0_i32 = arith.constant 0 : i32
    %c0_i32_0 = arith.constant 0 : i32
    return %arg0, %arg1, %c0_i32 : i32, i32, i32
  }
  func.func @transform_1(%arg0: i32, %arg1: i32) -> (i32, i32, i32) {
    %c0_i32 = arith.constant 0 : i32
    %c0_i32_0 = arith.constant 0 : i32
    return %arg0, %arg1, %c0_i32 : i32, i32, i32
  }
  func.func @transform_2(%arg0: i32, %arg1: i32) -> (i32, i32) {
    %c0_i32 = arith.constant 0 : i32
    %c0_i32_0 = arith.constant 0 : i32
    %c0_i32_1 = arith.constant 0 : i32
    return %c0_i32, %c0_i32_0 : i32, i32
  }
  func.func @transform_3(%arg0: i32, %arg1: i32) -> (i32, i32, i32) {
    %c0_i32 = arith.constant 0 : i32
    %c0_i32_0 = arith.constant 0 : i32
    return %arg0, %arg1, %c0_i32 : i32, i32, i32
  }
}

</mosaic_0001>

<bundles_post_ra>
// kernel: transed_groupnorm_forward.1
= control target key start
LH: loop header
LB: loop body
LE: loop exit
PB: predicated region body
PF: predicated region fallthrough
CT: control target
= control target key end

     0   :  { %s2165_s12 = smov 0   ;;  %s2167_s13 = smov 0   ;;  %s2661_s0 = inlined_call_operand.vmem [shape: f32[2,64,256], index: 0, kind: input, shape index: {}]   ;;  %s2662_s1 = inlined_call_operand.vmem [shape: f32[2,64,2], index: 1, kind: input, shape index: {}]   ;;  %s2663_s2 = inlined_call_operand.vmem [shape: f32[64,64], index: 2, kind: input, shape index: {}]   ;;  %s2664_s3 = inlined_call_operand.vmem [shape: f32[2,64,256], index: 3, kind: output, shape index: {}]  }
   0x1   :  { %s2169_s14 = smov 0  }
   0x2 LB: > { %s25_s15 = sadd.s32 1, %s2136_s13  ;;  %p1659_p0 = scmp.ge.s32.totalorder %s2140_s14, 1  ;;  %s2140_s14 = sphi %s2169_s14, %s13_s14   ;;  %s2136_s13 = sphi %s2167_s13, %s2693_s13   ;;  %s2132_s12 = sphi %s2165_s12, %s2692_s12  }
   0x3   : > { %p27_p1 = scmp.ge.s32.totalorder %s25_s15, 2  ;;  %p176_p2 = scmp.lt.s32.totalorder %s2140_s14, 3 }
   0x5   : > { %s2695_s15 = smov (%p27_p1, %s25_s15), 0  ;;  %p177_p3 = pnand %p1659_p0, %p176_p2 }
   0x7   : > { %180 = sbr.rel (%p177_p3) target bundleno = 968 (0x3c8), region = 32 }
   0xe   : > { %p220_p4 = scmp.lt.s32.totalorder %s2132_s12, 1  ;;  %v342_v48 = vld [vmem:[%s2663_s2] sm:$0xff]  ;;  %vm350_vm0 = vcmask 523264   ;;  %v331_v55 = vlaneseq  ;;  %v343_v61 = vld [vmem:[%s2663_s2 + $0x8] sm:$0xff]  ;;  %s2142_s9 = smov 1  }
   0xf   : > { %v352_v49 = vsel %vm350_vm0, %v342_v48, 0  ;;  %s2143_s20 = smov 127  }
  0x10   : > { %s2697_s12 = smov (!%p220_p4, %s2132_s12), 1  ;;  %v2283_v50 = vand.u32 4294901760, %v352_v49  ;;  %v2290_v57 = vand.u32 127, %v331_v55 }
  0x11   : > { %s1668_s16 = sshll.u32 %s2697_s12, 7  ;;  %s1669_s10 = sshll.u32 %s2697_s12, 6 }
  0x12   : > { %s2191_s19 = scalar_lea.vmem %s2661_s0, %s1668_s16  ;;  %v2286_v51 = vsub.f32 %v352_v49, %v2283_v50  ;;  %vm333_vm1 = vcmp.eq.s32.totalorder %v2290_v57, 0  ;;  %s238_s18 = scalar_lea.vmem %s2662_s1, %s1669_s10 }
  0x13   : > { %v257_v0 = vld [vmem:[%s2191_s19 + $0x30] sm:$0xff]  ;;  %v258_v1 = vld [vmem:[%s2191_s19 + $0x38] sm:$0xff]  ;;  %v2196_v2 = vld [vmem:[%s2191_s19] sm:$0xff]  ;;  %s2620_s23 = scalar_lea.vmem %s2664_s3, %s1668_s16 }
  0x14   : > { %v276_v3 = vadd.f32 %v258_v1, %v257_v0  ;;  %v2199_v4 = vld [vmem:[%s2191_s19 + $0x8] sm:$0xff]  ;;  %v291_v5 = vmul.f32 %v2196_v2, %v2196_v2  ;;  %v2204_v6 = vld [vmem:[%s2191_s19 + $0x10] sm:$0xff]  ;;  %v2207_v7 = vld [vmem:[%s2191_s19 + $0x18] sm:$0xff]  ;;  %v297_v17 = vmul.f32 %v257_v0, %v257_v0  ;;  %v298_v18 = vmul.f32 %v258_v1, %v258_v1 }
  0x15   : > { %v267_v8 = vadd.f32 %v2199_v4, %v2196_v2  ;;  %v292_v9 = vmul.f32 %v2199_v4, %v2199_v4  ;;  %v293_v10 = vmul.f32 %v2204_v6, %v2204_v6  ;;  %v294_v11 = vmul.f32 %v2207_v7, %v2207_v7  ;;  %v2220_v14 = vld [vmem:[%s2191_s19 + $0x20] sm:$0xff]  ;;  %v2223_v15 = vld [vmem:[%s2191_s19 + $0x28] sm:$0xff]  ;;  %v2232_v24 = vld [vmem:[%s2191_s19 + $0x50] sm:$0xff] }
  0x16   : > { %277 = vadd.xlane.f32.xlu1 %v276_v3  ;;  %v270_v13 = vadd.f32 %v2207_v7, %v2204_v6  ;;  %v273_v19 = vadd.f32 %v2223_v15, %v2220_v14  ;;  %v295_v20 = vmul.f32 %v2220_v14, %v2220_v14  ;;  %v296_v21 = vmul.f32 %v2223_v15, %v2223_v15  ;;  %v2235_v25 = vld [vmem:[%s2191_s19 + $0x58] sm:$0xff]  ;;  %v2238_v26 = vld [vmem:[%s2191_s19 + $0x40] sm:$0xff]  ;;  %v2241_v27 = vld [vmem:[%s2191_s19 + $0x48] sm:$0xff] }
  0x17   : > { %268 = vadd.xlane.f32.xlu0 %v267_v8  ;;  %v307_v12 = vadd.f32 %v292_v9, %v291_v5  ;;  %v310_v16 = vadd.f32 %v294_v11, %v293_v10  ;;  %v316_v22 = vadd.f32 %v298_v18, %v297_v17  ;;  %2675 = vst [vmem:[#allocation2_spill] sm:$0xff] %v2232_v24  ;;  %2676 = vst [vmem:[#allocation3_spill] sm:$0xff] %v2235_v25  ;;  %v2256_v36 = vld [vmem:[%s2191_s19 + $0x70] sm:$0xff]  ;;  %v2259_v37 = vld [vmem:[%s2191_s19 + $0x78] sm:$0xff] }
  0x18   : > { %v313_v23 = vadd.f32 %v296_v21, %v295_v20  ;;  %2677 = vst [vmem:[#allocation4_spill] sm:$0xff] %v2241_v27  ;;  %v282_v28 = vadd.f32 %v2235_v25, %v2232_v24  ;;  %v301_v29 = vmul.f32 %v2232_v24, %v2232_v24  ;;  %v302_v30 = vmul.f32 %v2235_v25, %v2235_v25  ;;  %v2262_v38 = vld [vmem:[%s2191_s19 + $0x60] sm:$0xff]  ;;  %v2265_v39 = vld [vmem:[%s2191_s19 + $0x68] sm:$0xff]  ;;  %v344_v5 = vld [vmem:[%s2663_s2 + $0x10] sm:$0xff] }
  0x19   : > { %v279_v31 = vadd.f32 %v2241_v27, %v2238_v26  ;;  %v299_v32 = vmul.f32 %v2238_v26, %v2238_v26  ;;  %v300_v33 = vmul.f32 %v2241_v27, %v2241_v27  ;;  %2678 = vst [vmem:[#allocation5_spill] sm:$0xff] %v2256_v36  ;;  %2679 = vst [vmem:[#allocation6_spill] sm:$0xff] %v2259_v37  ;;  %v450_v52 = vand.u32 4294901760, %v2286_v51  ;;  %v345_v18 = vld [vmem:[%s2663_s2 + $0x18] sm:$0xff] }
  0x1a   : > { %308 = vadd.xlane.f32.xlu1 %v307_v12  ;;  %v322_v34 = vadd.f32 %v302_v30, %v301_v29  ;;  %2680 = vst [vmem:[#allocation7_spill] sm:$0xff] %v2262_v38  ;;  %2681 = vst [vmem:[#allocation8_spill] sm:$0xff] %v2265_v39  ;;  %v288_v40 = vadd.f32 %v2259_v37, %v2256_v36  ;;  %v305_v41 = vmul.f32 %v2256_v36, %v2256_v36 }
  0x1b   : > { %271 = vadd.xlane.f32.xlu0 %v270_v13  ;;  %v319_v35 = vadd.f32 %v300_v33, %v299_v32  ;;  %v306_v42 = vmul.f32 %v2259_v37, %v2259_v37  ;;  %v285_v43 = vadd.f32 %v2265_v39, %v2262_v38  ;;  %v303_v44 = vmul.f32 %v2262_v38, %v2262_v38  ;;  %v346_v33 = vld [vmem:[%s2663_s2 + $0x20] sm:$0xff] }
  0x1c   : > { %v304_v45 = vmul.f32 %v2265_v39, %v2265_v39  ;;  %v451_v53 = vsub.f32 %v2286_v51, %v450_v52  ;;  %1867 = vmatprep.mubr.f32.mxu0 %v450_v52  ;;  %v355_v3 = vsel %vm350_vm0, %v343_v61, 0  ;;  %v358_v13 = vsel %vm350_vm0, %v344_v5, 0 }
  0x1d   : > { %v328_v46 = vadd.f32 %v306_v42, %v305_v41  ;;  %v2306_v12 = vand.u32 4294901760, %v355_v3  ;;  %v361_v29 = vsel %vm350_vm0, %v345_v18, 0 }
  0x1e   : > { %311 = vadd.xlane.f32.xlu1 %v310_v16  ;;  %v325_v47 = vadd.f32 %v304_v45, %v303_v44  ;;  %v452_v54 = vand.u32 4294901760, %v451_v53 }
  0x1f   : > { %274 = vadd.xlane.f32.xlu0 %v273_v19 }
  0x20   : > { %1783 = vmatprep.mubr.f32.mxu1 %v452_v54 }
  0x22   : > { %317 = vadd.xlane.f32.xlu1 %v316_v22  ;;  %v2320_v22 = vand.u32 4294901760, %v358_v13 }
  0x23   : > { %314 = vadd.xlane.f32.xlu0 %v313_v23 }
  0x26   : > { %283 = vadd.xlane.f32.xlu1 %v282_v28  ;;  %v2323_v28 = vsub.f32 %v355_v3, %v2306_v12 }
  0x27   : > { %280 = vadd.xlane.f32.xlu0 %v279_v31 }
  0x2a   : > { %323 = vadd.xlane.f32.xlu1 %v322_v34  ;;  %v347_v34 = vld [vmem:[%s2663_s2 + $0x28] sm:$0xff] }
  0x2b   : > { %320 = vadd.xlane.f32.xlu0 %v319_v35  ;;  %v2339_v35 = vsub.f32 %v358_v13, %v2320_v22  ;;  %v367_v48 = vsel %vm350_vm0, %v347_v34, 0 }
  0x2e   : > { %289 = vadd.xlane.f32.xlu1 %v288_v40  ;;  %v2341_v40 = vand.u32 4294901760, %v361_v29 }
  0x2f   : > { %286 = vadd.xlane.f32.xlu0 %v285_v43  ;;  %v2666_v43 = vand.u32 4294901760, %v2323_v28 }
  0x32   : > { %329 = vadd.xlane.f32.xlu1 %v328_v46 }
  0x33   : > { %326 = vadd.xlane.f32.xlu0 %v325_v47  ;;  %v364_v47 = vsel %vm350_vm0, %v346_v33, 0 }
  0xa3   : > { %v278_v56 = vpop.xlane.xlu1 %277 }
  0xa4   : > { %v269_v58 = vpop.xlane.xlu0 %268 }
  0xa7   : > { %v309_v59 = vpop.xlane.xlu1 %308 }
  0xa8   : > { %v272_v60 = vpop.xlane.xlu0 %271  ;;  %v334_v62 = vsel %vm333_vm1, %v269_v58, %v309_v59  ;;  %v2361_v58 = vsub.f32 %v361_v29, %v2341_v40  ;;  %v348_v59 = vld [vmem:[%s2663_s2 + $0x30] sm:$0xff] }
  0xa9   : > { %v376_v8 = vand.u32 4294901760, %v334_v62  ;;  %v370_v13 = vsel %vm350_vm0, %v348_v59, 0 }
  0xab   : > { %v312_v63 = vpop.xlane.xlu1 %311  ;;  %v2343_v41 = vsub.f32 %v334_v62, %v376_v8 }
  0xac   : > { %v335_v0 = vsel %vm333_vm1, %v272_v60, %v312_v63  ;;  %v275_v1 = vpop.xlane.xlu0 %274  ;;  %v349_v60 = vld [vmem:[%s2663_s2 + $0x38] sm:$0xff]  ;;  %v2373_v63 = vsub.f32 %v2323_v28, %v2666_v43 }
  0xad   : > { %v379_v9 = vand.u32 4294901760, %v335_v0  ;;  %v531_v61 = vand.u32 4294901760, %v2343_v41 }
  0xae   : > { %v462_v29 = vand.u32 4294901760, %v2373_v63 }
  0xaf   : > { %v2304_v10 = vpack.c.bf16 %v379_v9, %v376_v8  ;;  %v318_v11 = vpop.xlane.xlu1 %317  ;;  %v2326_v30 = vsub.f32 %v335_v0, %v379_v9  ;;  %v2375_v0 = vand.u32 4294901760, %v364_v47 }
  0xb0   : > { %v337_v16 = vsel %vm333_vm1, %v278_v56, %v318_v11  ;;  %v315_v17 = vpop.xlane.xlu0 %314  ;;  %v2665_v56 = vand.u32 4294901760, %v2339_v35 }
  0xb1   : > { %v385_v19 = vand.u32 4294901760, %v337_v16  ;;  %v336_v20 = vsel %vm333_vm1, %v275_v1, %v315_v17  ;;  %1936 = vmatprep.subr.bf16.mxu1 %v2304_v10  ;;  %1984 = vmatprep.subr.bf16.mxu0 %v2304_v10  ;;  %v538_v44 = vand.u32 4294901760, %v2326_v30  ;;  %v2377_v1 = vand.u32 4294901760, %v367_v48 }
  0xb2   : > { %v382_v21 = vand.u32 4294901760, %v336_v20  ;;  %1938 = vmatpush3.bf16.msra.mxu1 %v2304_v10  ;;  %1986 = vmatpush3.bf16.msra.mxu0 %v2304_v10 }
  0xb3   : > { %v284_v23 = vpop.xlane.xlu1 %283  ;;  %v2353_v49 = vsub.f32 %v337_v16, %v385_v19  ;;  %v539_v8 = vsub.f32 %v2326_v30, %v538_v44  ;;  %v373_v16 = vsel %vm350_vm0, %v349_v60, 0  ;;  %v2404_v33 = vsub.f32 %v367_v48, %v2377_v1 }
  0xb4   : > { %v2328_v31 = vpack.c.bf16 %v385_v19, %v382_v21  ;;  %v281_v32 = vpop.xlane.xlu0 %280  ;;  %v2355_v52 = vsub.f32 %v336_v20, %v382_v21  ;;  %v471_v19 = vsub.f32 %v2339_v35, %v2665_v56  ;;  %v2670_v20 = vand.u32 4294901760, %v2361_v58 }
  0xb5   : > { %v552_v9 = vand.u32 4294901760, %v2353_v49  ;;  %v500_v57 = vand.u32 4294901760, %v2404_v33  ;;  %v1999_v39 = vpack.c.bf16 %v538_v44, %v531_v61 }
  0xb6   : > { %1940 = vmatprep.subr.bf16.mxu1 %v2328_v31  ;;  %1988 = vmatprep.subr.bf16.mxu0 %v2328_v31  ;;  %v545_v11 = vand.u32 4294901760, %v2355_v52  ;;  %v472_v44 = vand.u32 4294901760, %v471_v19 }
  0xb7   : > { %1942 = vmatpush3.bf16.msra.mxu1 %v2328_v31  ;;  %1990 = vmatpush3.bf16.msra.mxu0 %v2328_v31  ;;  %v324_v42 = vpop.xlane.xlu1 %323 }
  0xb8   : > { %v339_v45 = vsel %vm333_vm1, %v284_v23, %v324_v42  ;;  %v321_v46 = vpop.xlane.xlu0 %320  ;;  %v532_v23 = vsub.f32 %v2343_v41, %v531_v61  ;;  %v546_v59 = vsub.f32 %v2355_v52, %v545_v11 }
  0xb9   : > { %v391_v53 = vand.u32 4294901760, %v339_v45  ;;  %v338_v54 = vsel %vm333_vm1, %v281_v32, %v321_v46  ;;  %v2401_v32 = vsub.f32 %v364_v47, %v2375_v0  ;;  %v2408_v46 = vand.u32 4294901760, %v370_v13 }
  0xba   : > { %v388_v55 = vand.u32 4294901760, %v338_v54  ;;  %v553_v47 = vsub.f32 %v2353_v49, %v552_v9 }
  0xbb   : > { %v290_v62 = vpop.xlane.xlu1 %289  ;;  %v2386_v17 = vsub.f32 %v339_v45, %v391_v53  ;;  %v540_v45 = vand.u32 4294901760, %v539_v8  ;;  %v490_v56 = vand.u32 4294901760, %v2401_v32  ;;  %v2430_v43 = vsub.f32 %v370_v13, %v2408_v46 }
  0xbc   : > { %v2379_v3 = vpack.c.bf16 %v391_v53, %v388_v55  ;;  %v287_v5 = vpop.xlane.xlu0 %286  ;;  %v2388_v18 = vsub.f32 %v338_v54, %v388_v55  ;;  %v2410_v53 = vand.u32 4294901760, %v373_v16 }
  0xbd   : > { %v566_v48 = vand.u32 4294901760, %v2386_v17 }
  0xbe   : > { %1944 = vmatprep.subr.bf16.mxu1 %v2379_v3  ;;  %1992 = vmatprep.subr.bf16.mxu0 %v2379_v3  ;;  %v559_v60 = vand.u32 4294901760, %v2388_v18  ;;  %v2433_v37 = vsub.f32 %v373_v16, %v2410_v53  ;;  %v491_v16 = vsub.f32 %v2401_v32, %v490_v56 }
  0xbf   : > { %1946 = vmatpush3.bf16.msra.mxu1 %v2379_v3  ;;  %1994 = vmatpush3.bf16.msra.mxu0 %v2379_v3  ;;  %v330_v21 = vpop.xlane.xlu1 %329  ;;  %v567_v13 = vsub.f32 %v2386_v17, %v566_v48 }
  0xc0   : > { %v341_v34 = vsel %vm333_vm1, %v290_v62, %v330_v21  ;;  %v327_v42 = vpop.xlane.xlu0 %326  ;;  %v481_v62 = vsub.f32 %v2361_v58, %v2670_v20  ;;  %v533_v21 = vand.u32 4294901760, %v532_v23  ;;  %v547_v20 = vand.u32 4294901760, %v546_v59 }
  0xc1   : > { %v397_v54 = vand.u32 4294901760, %v341_v34  ;;  %v340_v55 = vsel %vm333_vm1, %v287_v5, %v327_v42  ;;  %v2003_v59 = vpack.c.bf16 %v552_v9, %v545_v11  ;;  %v568_v24 = vand.u32 4294901760, %v567_v13 }
  0xc2   : > { %v394_v63 = vand.u32 4294901760, %v340_v55  ;;  %v1951_v36 = vpack.c.bf16 %v540_v45, %v533_v21  ;;  %v482_v61 = vand.u32 4294901760, %v481_v62  ;;  %v501_v45 = vsub.f32 %v2404_v33, %v500_v57 }
  0xc3   : > { %v2421_v8 = vsub.f32 %v341_v34, %v397_v54  ;;  %v554_v34 = vand.u32 4294901760, %v553_v47  ;;  %v510_v47 = vand.u32 4294901760, %v2430_v43  ;;  %v2682_v21 = vand.u32 4294901760, %v2323_v28 }
  0xc4   : > { %v2425_v5 = vpack.c.bf16 %v397_v54, %v394_v63  ;;  %v2427_v42 = vsub.f32 %v340_v55, %v394_v63  ;;  %v560_v54 = vsub.f32 %v2388_v18, %v559_v60  ;;  %v520_v63 = vand.u32 4294901760, %v2433_v37 }
  0xc5   : > { %v580_v23 = vand.u32 4294901760, %v2421_v8  ;;  %v1955_v55 = vpack.c.bf16 %v554_v34, %v547_v20  ;;  %v2683_v9 = vand.u32 4294901760, %v2339_v35  ;;  %v492_v11 = vand.u32 4294901760, %v491_v16 }
  0xc6   : > { %v573_v38 = vand.u32 4294901760, %v2427_v42  ;;  %1948 = vmatprep.subr.bf16.mxu1 %v2425_v5  ;;  %1996 = vmatprep.subr.bf16.mxu0 %v2425_v5  ;;  %v561_v25 = vand.u32 4294901760, %v560_v54  ;;  %v502_v20 = vand.u32 4294901760, %v501_v45  ;;  %v521_v62 = vsub.f32 %v2433_v37, %v520_v63 }
  0xc7   : > { %1950 = vmatpush3.bf16.msra.mxu1 %v2425_v5  ;;  %1998 = vmatpush3.bf16.msra.mxu0 %v2425_v5  ;;  %v581_v19 = vsub.f32 %v2421_v8, %v580_v23  ;;  %v2684_v34 = vand.u32 4294901760, %v2361_v58  ;;  %v2007_v13 = vpack.c.bf16 %v566_v48, %v559_v60 }
  0xc8   : > { %1952 = vmatprep.subr.bf16.mxu1 %v1951_v36  ;;  %2000 = vmatprep.subr.bf16.mxu0 %v1999_v39  ;;  %v574_v27 = vsub.f32 %v2427_v42, %v573_v38  ;;  %v1959_v54 = vpack.c.bf16 %v568_v24, %v561_v25  ;;  %v2011_v45 = vpack.c.bf16 %v580_v23, %v573_v38 }
  0xc9   : > { %v1967_v24 = vpack.c.bf16 %v2326_v30, %v2343_v41  ;;  %v1971_v25 = vpack.c.bf16 %v2353_v49, %v2355_v52  ;;  %v1979_v38 = vpack.c.bf16 %v2421_v8, %v2427_v42 }
  0xca   : > { %1784 = vmatmul.mubr.f32.vlgmr.msra.gmra.mrb[0].mxu1 %v462_v29  ;;  %1868 = vmatmul.mubr.f32.vlgmr.msra.gmra.mrb[0].mxu0 %v2682_v21  ;;  %v511_v29 = vsub.f32 %v2430_v43, %v510_v47  ;;  %v522_v21 = vand.u32 4294901760, %v521_v62  ;;  %v2561_v62 = vld [vmem:[%s238_s18 + $0x18] sm:$0xff] }
  0xcb   : > { %1954 = vmatpush3.bf16.msra.mxu1 %v1951_v36  ;;  %2002 = vmatpush3.bf16.msra.mxu0 %v1999_v39  ;;  %v575_v36 = vand.u32 4294901760, %v574_v27  ;;  %v582_v39 = vand.u32 4294901760, %v581_v19  ;;  %v1975_v27 = vpack.c.bf16 %v2386_v17, %v2388_v18 }
  0xcc   : > { %1956 = vmatprep.subr.bf16.mxu1 %v1955_v55  ;;  %2004 = vmatprep.subr.bf16.mxu0 %v2003_v59 }
  0xcd   : > { %1786 = vmatprep.mubr.f32.mxu1 %v472_v44  ;;  %1870 = vmatprep.mubr.f32.mxu0 %v2683_v9  ;;  %v512_v44 = vand.u32 4294901760, %v511_v29  ;;  %v1963_v16 = vpack.c.bf16 %v582_v39, %v575_v36  ;;  %v2555_v29 = vld [vmem:[%s238_s18 + $0x10] sm:$0xff]  ;;  %v2577_v36 = vld [vmem:[%s238_s18 + $0x38] sm:$0xff] }
  0xce   : > { %1787 = vmatmul.mubr.f32.gmra.mrb[2].mxu1 %v482_v61  ;;  %1871 = vmatmul.mubr.f32.gmra.mrb[2].mxu0 %v2684_v34  ;;  %v2563_v34 = vld [vmem:[%s238_s18 + $0x20] sm:$0xff] }
  0xcf   : > { %1958 = vmatpush3.bf16.msra.mxu1 %v1955_v55  ;;  %2006 = vmatpush3.bf16.msra.mxu0 %v2003_v59 }
  0xd0   : > { %1960 = vmatprep.subr.bf16.mxu1 %v1959_v54  ;;  %2008 = vmatprep.subr.bf16.mxu0 %v2007_v13 }
  0xd1   : > { %1789 = vmatprep.mubr.f32.mxu1 %v492_v11  ;;  %1873 = vmatprep.mubr.f32.mxu0 %v490_v56  ;;  %v2548_v11 = vld [vmem:[%s238_s18] sm:$0xff] }
  0xd2   : > { %1790 = vmatmul.mubr.f32.gmra.mrb[4].mxu1 %v502_v20  ;;  %1874 = vmatmul.mubr.f32.gmra.mrb[4].mxu0 %v500_v57  ;;  %v2553_v20 = vld [vmem:[%s238_s18 + $0x8] sm:$0xff] }
  0xd3   : > { %1962 = vmatpush3.bf16.msra.mxu1 %v1959_v54  ;;  %2010 = vmatpush3.bf16.msra.mxu0 %v2007_v13  ;;  %v2569_v54 = vld [vmem:[%s238_s18 + $0x28] sm:$0xff]  ;;  %v2571_v13 = vld [vmem:[%s238_s18 + $0x30] sm:$0xff] }
  0xd4   : > { %1964 = vmatprep.subr.bf16.mxu1 %v1963_v16  ;;  %2012 = vmatprep.subr.bf16.mxu0 %v2011_v45 }
  0xd5   : > { %1792 = vmatprep.mubr.f32.mxu1 %v512_v44  ;;  %1876 = vmatprep.mubr.f32.mxu0 %v510_v47 }
  0xd6   : > { %1793 = vmatmul.mubr.f32.gmra.mrb[6].mxu1 %v522_v21  ;;  %1877 = vmatmul.mubr.f32.gmra.mrb[6].mxu0 %v520_v63 }
  0xd7   : > { %1966 = vmatpush3.bf16.msra.mxu1 %v1963_v16  ;;  %2014 = vmatpush3.bf16.msra.mxu0 %v2011_v45 }
  0xd8   : > { %1968 = vmatprep.subr.bf16.mxu1 %v1967_v24  ;;  %2016 = vmatprep.subr.bf16.mxu0 %v2304_v10 }
  0xd9   : > { %1811 = vmatprep.mubr.f32.mxu1 %v2283_v50  ;;  %1895 = vmatprep.mubr.f32.mxu0 %v2283_v50 }
  0xda   : > { %1812 = vmatmul.mubr.f32.vlgmr.msra.gmra.mrb[0].mxu1 %v2306_v12  ;;  %1896 = vmatmul.mubr.f32.vlgmr.msra.gmra.mrb[0].mxu0 %v2306_v12 }
  0xdb   : > { %1970 = vmatpush3.bf16.msra.mxu1 %v1967_v24  ;;  %2018 = vmatpush3.bf16.msra.mxu0 %v2304_v10 }
  0xdc   : > { %1972 = vmatprep.subr.bf16.mxu1 %v1971_v25  ;;  %2020 = vmatprep.subr.bf16.mxu0 %v2328_v31 }
  0xdd   : > { %1814 = vmatprep.mubr.f32.mxu1 %v2320_v22  ;;  %1898 = vmatprep.mubr.f32.mxu0 %v2320_v22 }
  0xde   : > { %1815 = vmatmul.mubr.f32.gmra.mrb[2].mxu1 %v2341_v40  ;;  %1899 = vmatmul.mubr.f32.gmra.mrb[2].mxu0 %v2341_v40 }
  0xdf   : > { %1974 = vmatpush3.bf16.msra.mxu1 %v1971_v25  ;;  %2022 = vmatpush3.bf16.msra.mxu0 %v2328_v31 }
  0xe0   : > { %1976 = vmatprep.subr.bf16.mxu1 %v1975_v27  ;;  %2024 = vmatprep.subr.bf16.mxu0 %v2379_v3 }
  0xe1   : > { %1817 = vmatprep.mubr.f32.mxu1 %v2375_v0  ;;  %1901 = vmatprep.mubr.f32.mxu0 %v2375_v0 }
  0xe2   : > { %1818 = vmatmul.mubr.f32.gmra.mrb[4].mxu1 %v2377_v1  ;;  %1902 = vmatmul.mubr.f32.gmra.mrb[4].mxu0 %v2377_v1 }
  0xe3   : > { %1978 = vmatpush3.bf16.msra.mxu1 %v1975_v27  ;;  %2026 = vmatpush3.bf16.msra.mxu0 %v2379_v3 }
  0xe4   : > { %1980 = vmatprep.subr.bf16.mxu1 %v1979_v38  ;;  %2028 = vmatprep.subr.bf16.mxu0 %v2425_v5 }
  0xe5   : > { %1820 = vmatprep.mubr.f32.mxu1 %v2408_v46  ;;  %1904 = vmatprep.mubr.f32.mxu0 %v2408_v46 }
  0xe6   : > { %1821 = vmatmul.mubr.f32.gmra.mrb[6].mxu1 %v2410_v53  ;;  %1905 = vmatmul.mubr.f32.gmra.mrb[6].mxu0 %v2410_v53 }
  0xe7   : > { %1982 = vmatpush3.bf16.msra.mxu1 %v1979_v38  ;;  %2030 = vmatpush3.bf16.msra.mxu0 %v2425_v5 }
  0xe8   : > { %1839 = vmatprep.mubr.f32.mxu1 %v2286_v51  ;;  %1923 = vmatprep.mubr.f32.mxu0 %v2283_v50 }
  0xea   : > { %1840 = vmatmul.mubr.f32.vlgmr.msra.gmra.mrb[0].mxu1 %v2323_v28  ;;  %1924 = vmatmul.mubr.f32.vlgmr.msra.gmra.mrb[0].mxu0 %v2306_v12 }
  0xeb   : > { %1842 = vmatprep.mubr.f32.mxu1 %v2339_v35  ;;  %1926 = vmatprep.mubr.f32.mxu0 %v2320_v22 }
  0xee   : > { %1843 = vmatmul.mubr.f32.gmra.mrb[2].mxu1 %v2361_v58  ;;  %1927 = vmatmul.mubr.f32.gmra.mrb[2].mxu0 %v2341_v40 }
  0xef   : > { %1845 = vmatprep.mubr.f32.mxu1 %v2401_v32  ;;  %1929 = vmatprep.mubr.f32.mxu0 %v2375_v0 }
  0xf2   : > { %1846 = vmatmul.mubr.f32.gmra.mrb[4].mxu1 %v2404_v33  ;;  %1930 = vmatmul.mubr.f32.gmra.mrb[4].mxu0 %v2377_v1 }
  0xf3   : > { %1848 = vmatprep.mubr.f32.mxu1 %v2430_v43  ;;  %1932 = vmatprep.mubr.f32.mxu0 %v2408_v46 }
  0xf6   : > { %1849 = vmatmul.mubr.f32.gmra.mrb[6].mxu1 %v2433_v37  ;;  %1933 = vmatmul.mubr.f32.gmra.mrb[6].mxu0 %v2410_v53 }
 0x1bd   : > { %v1841_v50 = vpop.f32.mrb[0].mxu1  ;;  %v1925_v51 = vpop.f32.mrb[0].mxu0 }
 0x1be   : > { %v2031_v10 = vadd.f32 %v1925_v51, %v1841_v50  ;;  %v765_v12 = vpop.f32.mrb[1].mxu1  ;;  %v1167_v22 = vpop.f32.mrb[1].mxu0 }
 0x1bf   : > { %v2032_v28 = vadd.f32 %v1167_v22, %v765_v12 }
 0x1c0   : > { %v2505_v30 = vmul.f32 0.001953125, %v2031_v10 }
 0x1c1   : > { %v2507_v31 = vmul.f32 0.001953125, %v2032_v28  ;;  %v1844_v35 = vpop.f32.mrb[2].mxu1  ;;  %v1928_v40 = vpop.f32.mrb[2].mxu0 }
 0x1c2   : > { %v2033_v41 = vadd.f32 %v1928_v40, %v1844_v35  ;;  %v779_v43 = vpop.f32.mrb[3].mxu1  ;;  %v1179_v49 = vpop.f32.mrb[3].mxu0  ;;  %v1222_v37 = vmul.f32 %v2505_v30, %v2505_v30 }
 0x1c3   : > { %v2034_v52 = vadd.f32 %v1179_v49, %v779_v43  ;;  %v1221_v56 = vmul.f32 %v2507_v31, %v2507_v31 }
 0x1c4   : > { %v2513_v58 = vmul.f32 0.001953125, %v2033_v41  ;;  %1239 = vrot.lane.b32.xlu1 %v1222_v37, %s2142_s9 }
 0x1c5   : > { %v1931_v0 = vpop.f32.mrb[4].mxu0  ;;  %1237 = vrot.lane.b32.xlu0 %v1221_v56, %s2142_s9  ;;  %v1847_v1 = vpop.f32.mrb[4].mxu1  ;;  %v2517_v3 = vmul.f32 0.001953125, %v2034_v52 }
 0x1c6   : > { %v2035_v17 = vadd.f32 %v1931_v0, %v1847_v1  ;;  %v793_v18 = vpop.f32.mrb[5].mxu1  ;;  %v1191_v32 = vpop.f32.mrb[5].mxu0  ;;  %v1224_v33 = vmul.f32 %v2513_v58, %v2513_v58 }
 0x1c7   : > { %v2036_v46 = vadd.f32 %v1191_v32, %v793_v18  ;;  %v1223_v23 = vmul.f32 %v2517_v3, %v2517_v3 }
 0x1c8   : > { %1243 = vrot.lane.b32.xlu1 %v1224_v33, %s2142_s9  ;;  %v2524_v8 = vmul.f32 0.001953125, %v2035_v17 }
 0x1c9   : > { %v2522_v53 = vmul.f32 0.001953125, %v2036_v46  ;;  %v1850_v48 = vpop.f32.mrb[6].mxu1  ;;  %v1934_v60 = vpop.f32.mrb[6].mxu0 }
 0x1ca   : > { %v2037_v57 = vadd.f32 %v1934_v60, %v1850_v48  ;;  %v807_v5 = vpop.f32.mrb[7].mxu1  ;;  %v1203_v42 = vpop.f32.mrb[7].mxu0  ;;  %v1226_v63 = vmul.f32 %v2524_v8, %v2524_v8 }
 0x1cb   : > { %v2038_v61 = vadd.f32 %v1203_v42, %v807_v5  ;;  %v1225_v55 = vmul.f32 %v2522_v53, %v2522_v53 }
 0x1cc   : > { %1241 = vrot.lane.b32.xlu1 %v1223_v23, %s2142_s9  ;;  %v2535_v47 = vmul.f32 0.001953125, %v2037_v57 }
 0x1cd   : > { %v2532_v59 = vmul.f32 0.001953125, %v2038_v61  ;;  %1245 = vrot.lane.b32.xlu0 %v1225_v55, %s2142_s9 }
 0x1ce   : > { %v1228_v9 = vmul.f32 %v2535_v47, %v2535_v47 }
 0x1cf   : > { %v1227_v19 = vmul.f32 %v2532_v59, %v2532_v59 }
 0x1d0   : > { %1247 = vrot.lane.b32.xlu1 %v1226_v63, %s2142_s9 }
 0x1d1   : > { %1249 = vrot.lane.b32.xlu0 %v1227_v19, %s2142_s9 }
 0x1d4   : > { %1251 = vrot.lane.b32.xlu1 %v1228_v9, %s2142_s9 }
 0x1d5   : > { %1309 = vrot.lane.b32.xlu0 %v2548_v11, %s2142_s9 }
 0x1d8   : > { %1311 = vrot.lane.b32.xlu1 %v2553_v20, %s2142_s9 }
 0x1d9   : > { %1313 = vrot.lane.b32.xlu0 %v2555_v29, %s2142_s9 }
 0x1dc   : > { %1315 = vrot.lane.b32.xlu1 %v2561_v62, %s2142_s9 }
 0x1dd   : > { %1317 = vrot.lane.b32.xlu0 %v2563_v34, %s2142_s9 }
 0x1e0   : > { %1319 = vrot.lane.b32.xlu1 %v2569_v54, %s2142_s9 }
 0x1e1   : > { %1321 = vrot.lane.b32.xlu0 %v2571_v13, %s2142_s9 }
 0x1e4   : > { %1323 = vrot.lane.b32.xlu1 %v2577_v36, %s2142_s9 }
 0x236   : > { %v1240_v39 = vpop.permute.xlu1 %1239 }
 0x237   : > { %v1262_v44 = vsub.f32 %v2505_v30, %v1240_v39  ;;  %v1238_v16 = vpop.permute.xlu0 %1237 }
 0x238   : > { %v1261_v45 = vsub.f32 %v2507_v31, %v1238_v16 }
 0x239   : > { %v1270_v21 = vmax.f32 %v1262_v44, 0.0 }
 0x23a   : > { %v1269_v24 = vmax.f32 %v1261_v45, 0.0  ;;  %v1244_v25 = vpop.permute.xlu1 %1243 }
 0x23b   : > { %v1264_v27 = vsub.f32 %v2513_v58, %v1244_v25  ;;  %v1278_v38 = vadd.f32 1e-05, %v1270_v21  ;;  %v2144_v21 = vmov 1  }
 0x23c   : > { %v1277_v50 = vadd.f32 1e-05, %v1269_v24  ;;  %2099 = vset.pattern.permute.xlu1 %v2144_v21  ;;  %2098 = vset.pattern.permute.xlu0 %v2144_v21 }
 0x23d   : > { %v1272_v51 = vmax.f32 %v1264_v27, 0.0 }
 0x23e   : > { %2100 = vrsqrt.f32 %v1277_v50  ;;  %v1242_v10 = vpop.permute.xlu1 %1241 }
 0x23f   : > { %v1263_v12 = vsub.f32 %v2517_v3, %v1242_v10  ;;  %v1246_v22 = vpop.permute.xlu0 %1245  ;;  %2102 = vrsqrt.f32 %v1278_v38  ;;  %v1280_v28 = vadd.f32 1e-05, %v1272_v51 }
 0x240   : > { %v1265_v35 = vsub.f32 %v2522_v53, %v1246_v22 }
 0x241   : > { %v1271_v40 = vmax.f32 %v1263_v12, 0.0  ;;  %2104 = vrsqrt.f32 %v1280_v28 }
 0x242   : > { %v1273_v41 = vmax.f32 %v1265_v35, 0.0  ;;  %v1248_v43 = vpop.permute.xlu1 %1247 }
 0x243   : > { %v1279_v49 = vadd.f32 1e-05, %v1271_v40  ;;  %v1266_v37 = vsub.f32 %v2524_v8, %v1248_v43  ;;  %v1250_v52 = vpop.permute.xlu0 %1249 }
 0x244   : > { %v1281_v56 = vadd.f32 1e-05, %v1273_v41  ;;  %v1267_v0 = vsub.f32 %v2532_v59, %v1250_v52 }
 0x245   : > { %2106 = vrsqrt.f32 %v1279_v49  ;;  %v1274_v1 = vmax.f32 %v1266_v37, 0.0 }
 0x246   : > { %v1275_v17 = vmax.f32 %v1267_v0, 0.0  ;;  %v1252_v18 = vpop.permute.xlu1 %1251  ;;  %2108 = vrsqrt.f32 %v1281_v56 }
 0x247   : > { %v1282_v32 = vadd.f32 1e-05, %v1274_v1  ;;  %v1268_v33 = vsub.f32 %v2535_v47, %v1252_v18  ;;  %v1310_v46 = vpop.permute.xlu0 %1309 }
 0x248   : > { %v2101_v48 = vpop.eup %2100  ;;  %v1283_v60 = vadd.f32 1e-05, %v1275_v17 }
 0x249   : > { %2110 = vrsqrt.f32 %v1282_v32  ;;  %v1276_v57 = vmax.f32 %v1268_v33, 0.0  ;;  %v1333_v5 = vmul.f32 %v2101_v48, %v1310_v46  ;;  %v2103_v42 = vpop.eup %2102 }
 0x24a   : > { %v1312_v23 = vpop.permute.xlu1 %1311  ;;  %2112 = vrsqrt.f32 %v1283_v60 }
 0x24b   : > { %v1284_v61 = vadd.f32 1e-05, %v1276_v57  ;;  %v1334_v55 = vmul.f32 %v2103_v42, %v1312_v23  ;;  %1349 = vrot.lane.b32.xlu0 %v1333_v5, %s2143_s20  ;;  %v1314_v63 = vpop.permute.xlu0 %1313  ;;  %v2105_v19 = vpop.eup %2104 }
 0x24d   : > { %2114 = vrsqrt.f32 %v1284_v61  ;;  %1351 = vrot.lane.b32.xlu1 %v1334_v55, %s2143_s20 }
 0x24e   : > { %v1316_v9 = vpop.permute.xlu1 %1315 }
 0x24f   : > { %v2107_v39 = vpop.eup %2106  ;;  %v1336_v44 = vmul.f32 %v2105_v19, %v1316_v9  ;;  %v1318_v16 = vpop.permute.xlu0 %1317 }
 0x250   : > { %v1335_v45 = vmul.f32 %v2107_v39, %v1314_v63  ;;  %v2109_v24 = vpop.eup %2108 }
 0x251   : > { %1355 = vrot.lane.b32.xlu1 %v1336_v44, %s2143_s20  ;;  %v1337_v38 = vmul.f32 %v2109_v24, %v1318_v16 }
 0x252   : > { %1353 = vrot.lane.b32.xlu0 %v1335_v45, %s2143_s20  ;;  %v1320_v25 = vpop.permute.xlu1 %1319 }
 0x253   : > { %v2111_v27 = vpop.eup %2110  ;;  %v1322_v10 = vpop.permute.xlu0 %1321 }
 0x254   : > { %v1338_v50 = vmul.f32 %v2111_v27, %v1320_v25  ;;  %v2113_v51 = vpop.eup %2112  ;;  %v2116_v27 = vld [vmem:[%s2191_s19 + $0x30] sm:$0xff] }
 0x255   : > { %v1339_v28 = vmul.f32 %v2113_v51, %v1322_v10 }
 0x256   : > { %1359 = vrot.lane.b32.xlu1 %v1338_v50, %s2143_s20  ;;  %1357 = vrot.lane.b32.xlu0 %v1337_v38, %s2143_s20  ;;  %v1324_v12 = vpop.permute.xlu1 %1323 }
 0x257   : > { %v2115_v22 = vpop.eup %2114 }
 0x258   : > { %v1340_v35 = vmul.f32 %v2115_v22, %v1324_v12 }
 0x25a   : > { %1363 = vrot.lane.b32.xlu1 %v1340_v35, %s2143_s20  ;;  %1361 = vrot.lane.b32.xlu0 %v1339_v28, %s2143_s20 }
 0x2bd   : > { %v1350_v40 = vpop.permute.xlu0 %1349 }
 0x2be   : > { %v1373_v41 = vmul.f32 %v1350_v40, %v2507_v31 }
 0x2bf   : > { %v1352_v43 = vpop.permute.xlu1 %1351 }
 0x2c0   : > { %v1374_v49 = vmul.f32 %v1352_v43, %v2505_v30  ;;  %1389 = vrot.lane.b32.xlu0 %v1373_v41, %s2142_s9  ;;  %v2685_v43 = vld [vmem:[#allocation4_spill] sm:$0xff] }
 0x2c2   : > { %1391 = vrot.lane.b32.xlu1 %v1374_v49, %s2142_s9 }
 0x2c3   : > { %v1356_v37 = vpop.permute.xlu1 %1355 }
 0x2c4   : > { %v1376_v52 = vmul.f32 %v1356_v37, %v2513_v58  ;;  %v1354_v56 = vpop.permute.xlu0 %1353  ;;  %v2686_v37 = vld [vmem:[#allocation2_spill] sm:$0xff] }
 0x2c5   : > { %v1375_v0 = vmul.f32 %v1354_v56, %v2517_v3  ;;  %v2687_v56 = vld [vmem:[#allocation3_spill] sm:$0xff] }
 0x2c6   : > { %1395 = vrot.lane.b32.xlu1 %v1376_v52, %s2142_s9 }
 0x2c7   : > { %1393 = vrot.lane.b32.xlu0 %v1375_v0, %s2142_s9 }
 0x2c8   : > { %v1360_v1 = vpop.permute.xlu1 %1359  ;;  %v1358_v17 = vpop.permute.xlu0 %1357 }
 0x2c9   : > { %v1378_v31 = vmul.f32 %v1360_v1, %v2524_v8  ;;  %v1377_v30 = vmul.f32 %v1358_v17, %v2522_v53 }
 0x2cb   : > { %1399 = vrot.lane.b32.xlu1 %v1378_v31, %s2142_s9  ;;  %1397 = vrot.lane.b32.xlu0 %v1377_v30, %s2142_s9 }
 0x2cc   : > { %v1364_v18 = vpop.permute.xlu1 %1363  ;;  %v1362_v32 = vpop.permute.xlu0 %1361 }
 0x2cd   : > { %v1380_v58 = vmul.f32 %v1364_v18, %v2535_v47  ;;  %v1379_v3 = vmul.f32 %v1362_v32, %v2532_v59  ;;  %v2689_v32 = vld [vmem:[#allocation8_spill] sm:$0xff] }
 0x2cf   : > { %1403 = vrot.lane.b32.xlu1 %v1380_v58, %s2142_s9  ;;  %1401 = vrot.lane.b32.xlu0 %v1379_v3, %s2142_s9  ;;  %v2690_v3 = vld [vmem:[#allocation5_spill] sm:$0xff] }
 0x2d3   : > { %1426 = vperm.xlu1 %2099, %v1334_v55   ;;  %1422 = vperm.xlu0 %2098, %v1333_v5  }
 0x2d7   : > { %1430 = vperm.xlu1 %2099, %v1335_v45   ;;  %1434 = vperm.xlu0 %2098, %v1336_v44  }
 0x2db   : > { %1438 = vperm.xlu1 %2099, %v1337_v38   ;;  %1442 = vperm.xlu0 %2098, %v1338_v50   ;;  %v2117_v50 = vld [vmem:[%s2191_s19 + $0x38] sm:$0xff] }
 0x2df   : > { %1446 = vperm.xlu1 %2099, %v1339_v28   ;;  %1450 = vperm.xlu0 %2098, %v1340_v35  }
 0x332   : > { %v1390_v53 = vpop.permute.xlu0 %1389 }
 0x333   : > { %v1413_v8 = vsub.f32 %v2548_v11, %v1390_v53 }
 0x334   : > { %v1392_v33 = vpop.permute.xlu1 %1391 }
 0x335   : > { %v1414_v47 = vsub.f32 %v2553_v20, %v1392_v33  ;;  %1471 = vperm.xlu1 %2099, %v1413_v8   ;;  %v2691_v8 = vld [vmem:[#allocation6_spill] sm:$0xff] }
 0x337   : > { %1476 = vperm.xlu0 %2098, %v1414_v47  }
 0x338   : > { %v1396_v59 = vpop.permute.xlu1 %1395 }
 0x339   : > { %v1416_v46 = vsub.f32 %v2561_v62, %v1396_v59  ;;  %v1394_v48 = vpop.permute.xlu0 %1393 }
 0x33a   : > { %v1415_v60 = vsub.f32 %v2555_v29, %v1394_v48 }
 0x33b   : > { %1486 = vperm.xlu0 %2098, %v1416_v46  }
 0x33c   : > { %1481 = vperm.xlu1 %2099, %v1415_v60  }
 0x33d   : > { %v1400_v57 = vpop.permute.xlu1 %1399  ;;  %v1398_v5 = vpop.permute.xlu0 %1397 }
 0x33e   : > { %v1418_v42 = vsub.f32 %v2569_v54, %v1400_v57  ;;  %v1417_v23 = vsub.f32 %v2563_v34, %v1398_v5 }
 0x340   : > { %1496 = vperm.xlu0 %2098, %v1418_v42   ;;  %1491 = vperm.xlu1 %2099, %v1417_v23  }
 0x341   : > { %v1404_v11 = vpop.permute.xlu1 %1403  ;;  %v1402_v20 = vpop.permute.xlu0 %1401 }
 0x342   : > { %v1420_v61 = vsub.f32 %v2577_v36, %v1404_v11  ;;  %v1419_v62 = vsub.f32 %v2571_v13, %v1402_v20 }
 0x344   : > { %1506 = vperm.xlu0 %2098, %v1420_v61   ;;  %1501 = vperm.xlu1 %2099, %v1419_v62  }
 0x352   : > { %v1427_v29 = vpop.permute.xlu1 %1426  ;;  %v1423_v55 = vpop.permute.xlu0 %1422 }
 0x353   : > { %v1453_v44 = vmul.f32 %v1423_v55, %v2196_v2  ;;  %v1454_v16 = vmul.f32 %v1423_v55, %v2199_v4  ;;  %v1455_v36 = vmul.f32 %v1427_v29, %v2204_v6  ;;  %v1456_v45 = vmul.f32 %v1427_v29, %v2207_v7 }
 0x356   : > { %v1431_v63 = vpop.permute.xlu1 %1430  ;;  %v1435_v19 = vpop.permute.xlu0 %1434 }
 0x357   : > { %v1459_v38 = vmul.f32 %v2116_v27, %v1435_v19  ;;  %v1460_v51 = vmul.f32 %v2117_v50, %v1435_v19  ;;  %v1457_v6 = vmul.f32 %v1431_v63, %v2220_v14  ;;  %v1458_v7 = vmul.f32 %v1431_v63, %v2223_v15 }
 0x35a   : > { %v1439_v9 = vpop.permute.xlu1 %1438  ;;  %v1443_v39 = vpop.permute.xlu0 %1442 }
 0x35b   : > { %v1461_v41 = vmul.f32 %v1439_v9, %v2238_v26  ;;  %v1462_v49 = vmul.f32 %v1439_v9, %v2685_v43  ;;  %v1463_v52 = vmul.f32 %v1443_v39, %v2686_v37  ;;  %v1464_v14 = vmul.f32 %v1443_v39, %v2687_v56  ;;  %v2688_v26 = vld [vmem:[#allocation7_spill] sm:$0xff] }
 0x35e   : > { %v1447_v54 = vpop.permute.xlu1 %1446  ;;  %v1451_v34 = vpop.permute.xlu0 %1450 }
 0x35f   : > { %v1465_v18 = vmul.f32 %v1447_v54, %v2688_v26  ;;  %v1466_v58 = vmul.f32 %v1447_v54, %v2689_v32  ;;  %v1467_v53 = vmul.f32 %v1451_v34, %v2690_v3  ;;  %v1468_v33 = vmul.f32 %v1451_v34, %v2691_v8 }
 0x3b4   : > { %v1472_v13 = vpop.permute.xlu1 %1471 }
 0x3b5   : > { %v1509_v21 = vadd.f32 %v1472_v13, %v1453_v44  ;;  %v1510_v24 = vadd.f32 %v1472_v13, %v1454_v16 }
 0x3b6   : > { %v1477_v2 = vpop.permute.xlu0 %1476 }
 0x3b7   : > { %1525 = vst [vmem:[%s2620_s23] sm:$0xff] %v1509_v21  ;;  %1526 = vst [vmem:[%s2620_s23 + $0x8] sm:$0xff] %v1510_v24  ;;  %v1511_v4 = vadd.f32 %v1477_v2, %v1455_v36  ;;  %v1512_v25 = vadd.f32 %v1477_v2, %v1456_v45 }
 0x3b9   : > { %1527 = vst [vmem:[%s2620_s23 + $0x10] sm:$0xff] %v1511_v4  ;;  %1528 = vst [vmem:[%s2620_s23 + $0x18] sm:$0xff] %v1512_v25 }
 0x3ba   : > { %v1487_v10 = vpop.permute.xlu0 %1486 }
 0x3bb   : > { %v1515_v12 = vadd.f32 %v1487_v10, %v1459_v38  ;;  %v1516_v22 = vadd.f32 %v1487_v10, %v1460_v51  ;;  %v1482_v28 = vpop.permute.xlu1 %1481 }
 0x3bc   : > { %v1513_v35 = vadd.f32 %v1482_v28, %v1457_v6  ;;  %v1514_v40 = vadd.f32 %v1482_v28, %v1458_v7 }
 0x3bd   : > { %1531 = vst [vmem:[%s2620_s23 + $0x30] sm:$0xff] %v1515_v12  ;;  %1532 = vst [vmem:[%s2620_s23 + $0x38] sm:$0xff] %v1516_v22 }
 0x3be   : > { %1529 = vst [vmem:[%s2620_s23 + $0x20] sm:$0xff] %v1513_v35  ;;  %1530 = vst [vmem:[%s2620_s23 + $0x28] sm:$0xff] %v1514_v40 }
 0x3bf   : > { %v1492_v15 = vpop.permute.xlu1 %1491  ;;  %v1497_v0 = vpop.permute.xlu0 %1496 }
 0x3c0   : > { %v1517_v1 = vadd.f32 %v1492_v15, %v1461_v41  ;;  %v1518_v17 = vadd.f32 %v1492_v15, %v1462_v49  ;;  %v1519_v31 = vadd.f32 %v1497_v0, %v1463_v52  ;;  %v1520_v30 = vadd.f32 %v1497_v0, %v1464_v14 }
 0x3c2   : > { %1533 = vst [vmem:[%s2620_s23 + $0x40] sm:$0xff] %v1517_v1  ;;  %1534 = vst [vmem:[%s2620_s23 + $0x48] sm:$0xff] %v1518_v17 }
 0x3c3   : > { %1535 = vst [vmem:[%s2620_s23 + $0x50] sm:$0xff] %v1519_v31  ;;  %1536 = vst [vmem:[%s2620_s23 + $0x58] sm:$0xff] %v1520_v30  ;;  %v1502_v47 = vpop.permute.xlu1 %1501  ;;  %v1507_v59 = vpop.permute.xlu0 %1506 }
 0x3c4   : > { %v1521_v46 = vadd.f32 %v1502_v47, %v1465_v18  ;;  %v1522_v48 = vadd.f32 %v1502_v47, %v1466_v58  ;;  %v1523_v60 = vadd.f32 %v1507_v59, %v1467_v53  ;;  %v1524_v57 = vadd.f32 %v1507_v59, %v1468_v33 }
 0x3c6   : > { %1537 = vst [vmem:[%s2620_s23 + $0x60] sm:$0xff] %v1521_v46  ;;  %1538 = vst [vmem:[%s2620_s23 + $0x68] sm:$0xff] %v1522_v48 }
 0x3c7   : > { %1539 = vst [vmem:[%s2620_s23 + $0x70] sm:$0xff] %v1523_v60  ;;  %1540 = vst [vmem:[%s2620_s23 + $0x78] sm:$0xff] %v1524_v57 }
 0x3c8 PF: > { %s13_s14 = sadd.s32 1, %s2140_s14   ;;  %s2692_s12 = smov %s2136_s13 }
 0x3c9   : > { %p10_p5 = scmp.ge.s32.totalorder %s13_s14, 4   ;;  %s2693_s13 = smov %s2695_s15 }
 0x3cb   :  { %12 = sbr.rel (!%p10_p5) target bundleno = 2 (0x2), region = 65 }

</bundles_post_ra>
